<compile_context>
chip_gen: v7x
topology: tpu7x:2x2x1
jax: 0.10.0
libtpu: 0.0.40
codegen_flags: <defaults>
</compile_context>

<pallas_src>
import numpy as np
import jax
import jax.numpy as jnp
from jax import lax
from jax.experimental import pallas as pl
from jax.experimental.pallas import tpu as pltpu


def _embed_kernel(idx_ref, table_ref, o_ref):
    """idx_ref: (TBF, 1) int32, table_ref: (Vp, D) f32 (VMEM-resident),
    o_ref: (TBF, D) f32."""
    idx = idx_ref[...]                                   # (TBF, 1) int32
    tbf = idx.shape[0]
    vp = table_ref.shape[0]
    # Exact one-hot (0.0 / 1.0) -> matmul is an exact row selection.
    iota = lax.broadcasted_iota(jnp.int32, (tbf, vp), 1)
    onehot = (idx == iota).astype(table_ref.dtype)       # (TBF, Vp)
    o_ref[...] = jnp.dot(
        onehot, table_ref[...], preferred_element_type=jnp.float32
    ).astype(o_ref.dtype)


def embedding_layer(x, offsets, table, *, max_rows_per_step=1024):
    """x: (B, F) int32, offsets: (F,) or (1, F) int32, table: (V, D) f32
    -> (B, F, D) f32.  Matches EmbeddingLayer.forward."""
    B, F = x.shape
    V, D = table.shape

    # One XLA add + flatten: (B*F, 1) int32 shifted row indices.
    off = offsets.reshape(1, F).astype(jnp.int32)
    idx = (x.astype(jnp.int32) + off).reshape(B * F, 1)
    n_rows = B * F

    # Pad vocab to a lane multiple (padded zero rows are never selected).
    vp = max(128, ((V + 127) // 128) * 128)
    table_p = jnp.pad(table, ((0, vp - V), (0, 0))) if vp != V else table

    # Tile the flattened (batch*field) row axis.
    if n_rows <= max_rows_per_step:
        tbf, n_pad = n_rows, n_rows                 # single grid step
    else:
        tbf = max_rows_per_step                     # multiple of 8
        n_pad = pl.cdiv(n_rows, tbf) * tbf
    if n_pad != n_rows:
        idx = jnp.pad(idx, ((0, n_pad - n_rows), (0, 0)))

    out = pl.pallas_call(
        _embed_kernel,
        out_shape=jax.ShapeDtypeStruct((n_pad, D), table.dtype),
        grid=(n_pad // tbf,),
        in_specs=[
            pl.BlockSpec((tbf, 1), lambda i: (i, 0)),   # index tile per step
            pl.BlockSpec((vp, D), lambda i: (0, 0)),    # table resident in VMEM
        ],
        out_specs=pl.BlockSpec((tbf, D), lambda i: (i, 0)),
        compiler_params=pltpu.CompilerParams(
            dimension_semantics=("parallel",)),         # megacore on v7x
    )(idx, table_p)

    return out[:n_rows].reshape(B, F, D)


if __name__ == "__main__":
    # Module configuration (small shapes consistent with the forward pass).
    field_dims = (6, 5, 8, 4)          # num_fields = 4
    embed_dim = 32
    batch = 2

    vocab = int(sum(field_dims))
    num_fields = len(field_dims)

    # offsets = (0, *cumsum(field_dims)[:-1])  (same as the PyTorch module)
    offsets_np = np.array((0, *np.cumsum(field_dims)[:-1]), dtype=np.int32)
    offsets = jnp.asarray(offsets_np)

    key = jax.random.PRNGKey(0)
    k_idx, k_w = jax.random.split(key)

    # Deterministic per-field indices in [0, field_dims[f]).
    x = jax.random.randint(
        k_idx, (batch, num_fields), minval=0,
        maxval=jnp.asarray(field_dims, dtype=jnp.int32), dtype=jnp.int32)

    # Xavier-uniform init of the embedding weight (matches nn.init.xavier_uniform_).
    bound = float(np.sqrt(6.0 / (vocab + embed_dim)))
    table = jax.random.uniform(
        k_w, (vocab, embed_dim), minval=-bound, maxval=bound, dtype=jnp.float32)

    out = embedding_layer(x, offsets, table)
    out = jax.block_until_ready(out)

    # Self-check against the pure-JAX reference of the PyTorch semantics.
    ref = jnp.take(table, x + offsets[None, :], axis=0)    # (B, F, D)
    assert out.shape == (batch, num_fields, embed_dim)
    np.testing.assert_allclose(np.asarray(out), np.asarray(ref), rtol=1e-6, atol=1e-6)

    print("KERNEL_OK")
</pallas_src>

<mosaic_0001>
module attributes {stable_mosaic.version = 11 : i64} {
  func.func @_embed_kernel(%arg0: i32, %arg1: memref<8x1xi32, #tpu.memory_space<vmem>>, %arg2: memref<128x32xf32, #tpu.memory_space<vmem>>, %arg3: memref<8x32xf32, #tpu.memory_space<vmem>>) attributes {dimension_semantics = [#tpu.dimension_semantics<parallel>], iteration_bounds = array<i64: 1>, scalar_prefetch = 0 : i64, scratch_operands = 0 : i64, tpu.core_type = #tpu.core_type<tc>, window_params = [{transform_indices = @transform_0, window_bounds = array<i64: 8, 1>}, {pipeline_mode = #tpu.pipeline_mode<synchronous>, transform_indices = @transform_1, window_bounds = array<i64: 128, 32>}, {transform_indices = @transform_2, window_bounds = array<i64: 8, 32>}]} {
    %c0 = arith.constant 0 : index
    %c0_0 = arith.constant 0 : index
    %0 = vector.load %arg1[%c0, %c0_0] : memref<8x1xi32, #tpu.memory_space<vmem>>, vector<8x1xi32>
    %1 = tpu.iota {dimensions = array<i32: 1>} : vector<8x128xi32>
    %2 = vector.broadcast %0 : vector<8x1xi32> to vector<8x128xi32>
    %3 = arith.cmpi eq, %2, %1 : vector<8x128xi32>
    %4 = arith.extui %3 : vector<8x128xi1> to vector<8x128xi32>
    %5 = arith.sitofp %4 : vector<8x128xi32> to vector<8x128xf32>
    %c0_1 = arith.constant 0 : index
    %c0_2 = arith.constant 0 : index
    %6 = vector.load %arg2[%c0_1, %c0_2] : memref<128x32xf32, #tpu.memory_space<vmem>>, vector<128x32xf32>
    %cst = arith.constant dense<0.000000e+00> : vector<8x32xf32>
    %7 = tpu.matmul %5, %6, %cst {dimension_numbers = #tpu.dot_dimension_numbers<[1], [0], [0], [1], [0, 0, 1, 1], [], []>} : vector<8x128xf32>, vector<128x32xf32>, vector<8x32xf32> -> vector<8x32xf32>
    %c0_3 = arith.constant 0 : index
    %c0_4 = arith.constant 0 : index
    %8 = vector.load %arg3[%c0_3, %c0_4] : memref<8x32xf32, #tpu.memory_space<vmem>>, vector<8x32xf32>
    tpu.vector_store %arg3[%c0_3, %c0_4], %7 {strides = array<i32>} : memref<8x32xf32, #tpu.memory_space<vmem>>, vector<8x32xf32>,
    return
  }
  func.func @transform_0(%arg0: i32) -> (i32, i32) {
    %c0_i32 = arith.constant 0 : i32
    %c0_i32_0 = arith.constant 0 : i32
    return %arg0, %c0_i32 : i32, i32
  }
  func.func @transform_1(%arg0: i32) -> (i32, i32) {
    %c0_i32 = arith.constant 0 : i32
    %c0_i32_0 = arith.constant 0 : i32
    %c0_i32_1 = arith.constant 0 : i32
    return %c0_i32, %c0_i32_0 : i32, i32
  }
  func.func @transform_2(%arg0: i32) -> (i32, i32) {
    %c0_i32 = arith.constant 0 : i32
    %c0_i32_0 = arith.constant 0 : i32
    return %arg0, %c0_i32 : i32, i32
  }
}

</mosaic_0001>

<bundles_post_ra>
// kernel: tpu_custom_call.1
= control target key start
LH: loop header
LB: loop body
LE: loop exit
PB: predicated region body
PF: predicated region fallthrough
CT: control target
= control target key end

     0   :  { %v232_v3 = vmov 0   ;;  %v233_v4 = vmov 0.0|0.0   ;;  %vm234_vm0 = vmmov 0   ;;  %v235_v8 = vmov 0.0   ;;  %s316_s0 = inlined_call_operand.vmem [shape: s32[8,1], index: 0, kind: input, shape index: {}]   ;;  %s317_s1 = inlined_call_operand.vmem [shape: f32[128,32], index: 1, kind: input, shape index: {}]   ;;  %s318_s2 = inlined_call_operand.hbm [shape: f32[8,32], index: 2, kind: output, shape index: {}]  }
   0x1   :  { %v12_v0 = vld [vmem:[%s316_s0] sm:$0xff]  ;;  %v22_v2 = vld [vmem:[%s317_s1 + $0x8] sm:$0xff]  ;;  %207 = vset.pattern.permute.xlu0 %v232_v3  ;;  %177 = vmatprep.subr.bf16.mxu0 %v233_v4  ;;  %v23_v6 = vld [vmem:[%s317_s1 + $0x10] sm:$0xff] }
   0x2   :  { %v21_v1 = vld [vmem:[%s317_s1] sm:$0xff]  ;;  %v24_v7 = vld [vmem:[%s317_s1 + $0x18] sm:$0xff]  ;;  %16 = vperm.xlu0 %207, %v12_v0   ;;  %174 = vmatprep.mubr.msk.f32.mxu0 %vm234_vm0, %v235_v8  ;;  %v26_v11 = vld [vmem:[%s317_s1 + $0x28] sm:$0xff] }
   0x3   :  { %v178_v5 = vpack.c.bf16 %v22_v2, %v21_v1  ;;  %v181_v9 = vpack.c.bf16 %v24_v7, %v23_v6  ;;  %v25_v10 = vld [vmem:[%s317_s1 + $0x20] sm:$0xff] }
   0x5   :  { %179 = vmatpush3.bf16.msra.mxu0 %v178_v5 }
   0x6   :  { %180 = vmatprep.subr.bf16.mxu0 %v233_v4 }
   0x7   :  { %7 = vsyncpa [#allocation3], 0  ;;  %v184_v12 = vpack.c.bf16 %v26_v11, %v25_v10  ;;  %v27_v13 = vld [vmem:[%s317_s1 + $0x30] sm:$0xff]  ;;  %v28_v14 = vld [vmem:[%s317_s1 + $0x38] sm:$0xff]  ;;  %v13_v28 = vlaneseq  ;;  %v236_v31 = vmov 1.0   ;;  %s237_s14 = smov [#allocation2]  }
   0x8   :  { %v187_v15 = vpack.c.bf16 %v28_v14, %v27_v13  ;;  %v29_v16 = vld [vmem:[%s317_s1 + $0x40] sm:$0xff]  ;;  %v30_v17 = vld [vmem:[%s317_s1 + $0x48] sm:$0xff]  ;;  %v31_v19 = vld [vmem:[%s317_s1 + $0x50] sm:$0xff]  ;;  %s115_s15 = sshll.u32 %s237_s14, 4  ;;  %vm107_vm2 = vcmask 261120   ;;  %s116_s15 = int_to_ptr.vmem [resolvable:$true] %s115_s15 }
   0x9   :  { %182 = vmatpush3.bf16.msra.mxu0 %v181_v9  ;;  %v190_v18 = vpack.c.bf16 %v30_v17, %v29_v16  ;;  %v32_v20 = vld [vmem:[%s317_s1 + $0x58] sm:$0xff]  ;;  %v33_v22 = vld [vmem:[%s317_s1 + $0x60] sm:$0xff]  ;;  %v34_v23 = vld [vmem:[%s317_s1 + $0x68] sm:$0xff]  ;;  %v14_v29 = vand.u32 127, %v13_v28  ;;  %s208_s16 = scalar_lea.vmem %s116_s15, 128  ;;  %p213_p1 = scmp.lt.s32.totalorder %s116_s15, %s116_s15 }
   0xa   :  { %183 = vmatprep.subr.bf16.mxu0 %v233_v4  ;;  %v193_v21 = vpack.c.bf16 %v32_v20, %v31_v19  ;;  %v196_v24 = vpack.c.bf16 %v34_v23, %v33_v22  ;;  %v35_v25 = vld [vmem:[%s317_s1 + $0x70] sm:$0xff]  ;;  %v36_v26 = vld [vmem:[%s317_s1 + $0x78] sm:$0xff]  ;;  %p209_p0 = scmp.ne.s32.totalorder %s116_s15, %s208_s16  ;;  %p214_p2 = scmp.lt.s32.totalorder %s208_s16, %s208_s16 }
   0xb   :  { %v199_v27 = vpack.c.bf16 %v36_v26, %v35_v25 }
   0xc   :  { %p215_p3 = por %p214_p2, %p213_p1 }
   0xd   :  { %185 = vmatpush3.bf16.msra.mxu0 %v184_v12 }
   0xe   :  { %186 = vmatprep.subr.bf16.mxu0 %v233_v4  ;;  %p216_p4 = pnand %p215_p3, %p209_p0 }
  0x11   :  { %188 = vmatpush3.bf16.msra.mxu0 %v187_v15 }
  0x12   :  { %189 = vmatprep.subr.bf16.mxu0 %v233_v4 }
  0x15   :  { %191 = vmatpush3.bf16.msra.mxu0 %v190_v18 }
  0x16   :  { %192 = vmatprep.subr.bf16.mxu0 %v233_v4 }
  0x19   :  { %194 = vmatpush3.bf16.msra.mxu0 %v193_v21 }
  0x1a   :  { %195 = vmatprep.subr.bf16.mxu0 %v233_v4 }
  0x1d   :  { %197 = vmatpush3.bf16.msra.mxu0 %v196_v24 }
  0x1e   :  { %198 = vmatprep.subr.bf16.mxu0 %v233_v4 }
  0x21   :  { %200 = vmatpush3.bf16.msra.mxu0 %v199_v27 }
  0x81   :  { %v17_v30 = vpop.permute.xlu0 %16 }
  0x82   :  { %vm18_vm1 = vcmp.eq.s32.totalorder %v17_v30, %v14_v29 }
  0x83   :  { %175 = vmatmul.mubr.msk.f32.vlgmr.msra.gmra.mrb[0].mxu0 %vm18_vm1, %v236_v31 }
 0x156   :  { %v103_v32 = vpop.f32.mrb[0].mxu0 }
 0x157   :  { %108 = vst.msk [vmem:[#allocation2] sm:$0xff] %vm107_vm2, %v103_v32  ;;  %v176_v33 = vpop.f32.mrb[1].mxu0 }
 0x158   :  { %219 = shalt.err (!%p216_p4)
}
 0x159   :  { %s220_s18 = scalar_lea.hbm %s318_s2, 128 }
 0x15a   :  { %p221_p5 = scmp.ne.s32.totalorder %s318_s2, %s220_s18  ;;  %p224_p6 = scmp.lt.u32.totalorder %s220_s18, %s318_s2 }
 0x15c   :  { %p226_p7 = pnand %p224_p6, %p221_p5 }
 0x15e   :  { %229 = shalt.err (!%p226_p7)
}
 0x15f   :  { %118 = dma.vmem_to_hbm [thread:$0]  %s116_s15, 128, %s318_s2, [#allocation3]  }
 0x160   :  { %230 = dma.done.wait [#allocation3], 128  }
 0x161   :  { %231 = vsyncadd [#allocation3], 4294967168 }
 0x162   :  { %122 = vsyncpa [#allocation3], 1 }

</bundles_post_ra>
